<compile_context>
chip_gen: v6e
topology: v6e:2x2x1
jax: 0.10.0
libtpu: 0.0.40
codegen_flags: <defaults>
</compile_context>

<pallas_src>
import functools

import jax
import jax.numpy as jnp
from jax import lax
from jax.experimental import pallas as pl
from jax.experimental.pallas import tpu as pltpu


def _round_up(v, m):
    return ((v + m - 1) // m) * m


def _lstm_recurrence_kernel(gx_ref, whh_ref, h_out_ref, h_ref, c_ref, *,
                            hidden_pad, t_blk, seq_len, compute_dtype):
    """One (batch tile, time block) grid step of the LSTM recurrence.

    gx_ref   : (t_blk, tile_b, 4*Hp)  precomputed x@W_ih + b, time-major, bf16
    whh_ref  : (Hp, 4*Hp)             recurrent weight, VMEM-resident, bf16
    h_out_ref: (tile_b, Hp)           last-step hidden state, f32
    h_ref/c_ref: (tile_b, Hp)         f32 state, persists across time blocks
    """
    tt = pl.program_id(1)
    Hp = hidden_pad

    # Reset recurrent state at the start of each batch tile's time sweep.
    @pl.when(tt == 0)
    def _():
        h_ref[...] = jnp.zeros_like(h_ref)
        c_ref[...] = jnp.zeros_like(c_ref)

    def step(k, carry):
        h, c = carry
        # Single MXU matmul per serial step (input projection hoisted out);
        # bf16 operands, f32 accumulation.
        hh = jnp.dot(h.astype(compute_dtype), whh_ref[...],
                     preferred_element_type=jnp.float32)
        gates = gx_ref[k].astype(jnp.float32) + hh            # (tile_b, 4*Hp)
        # Gate order [i|f|g|o]; Hp is a multiple of 128 -> lane-aligned slices.
        i_g = jax.nn.sigmoid(gates[:, 0 * Hp:1 * Hp])
        f_g = jax.nn.sigmoid(gates[:, 1 * Hp:2 * Hp])
        g_g = jnp.tanh(gates[:, 2 * Hp:3 * Hp])
        o_g = jax.nn.sigmoid(gates[:, 3 * Hp:4 * Hp])
        c = f_g * c + i_g * g_g
        h = o_g * jnp.tanh(c)
        return h, c

    # Number of valid time steps in this block (last block may be zero-padded).
    steps = jnp.minimum(t_blk, seq_len - tt * t_blk)
    h, c = lax.fori_loop(0, steps, step, (h_ref[...], c_ref[...]))
    h_ref[...] = h
    c_ref[...] = c

    # Emit the last hidden state once, at the end of the time sweep.
    @pl.when(tt == pl.num_programs(1) - 1)
    def _():
        h_out_ref[...] = h.astype(h_out_ref.dtype)


def lstm_classifier(x, params, *, compute_dtype=jnp.bfloat16):
    """x: (B, T, input_size), batch_first like the PyTorch module. Returns (B, output_size)."""
    # TODO(synk): num_layers > 1 (stacked LSTM) not implemented; module default num_layers=1.
    B, T, D = x.shape
    H = params["w_hh"].shape[0]
    f32 = jnp.float32

    # ---- pad hidden size so every gate occupies whole 128-lane chunks ----
    Hp = _round_up(H, 128)

    def pad_gate_cols(w):
        lead = w.shape[:-1]
        w4 = w.reshape(lead + (4, H))
        w4 = jnp.pad(w4, [(0, 0)] * len(lead) + [(0, 0), (0, Hp - H)])
        return w4.reshape(lead + (4 * Hp,))

    w_ih = pad_gate_cols(params["w_ih"].astype(f32))                   # (D, 4Hp)
    b = pad_gate_cols(params["b"].astype(f32))                         # (1, 4Hp)
    w_hh = pad_gate_cols(
        jnp.pad(params["w_hh"].astype(f32), ((0, Hp - H), (0, 0))))    # (Hp, 4Hp)
    w_hh = w_hh.astype(compute_dtype)

    # ---- hoist x @ W_ih + b out of the recurrence (one big MXU matmul),
    #      time-major layout folded into the matmul output ----
    gates_x = jnp.einsum('btd,dg->tbg', x.astype(f32), w_ih) + b[0]    # (T, B, 4Hp)
    gates_x = gates_x.astype(compute_dtype)

    # ---- batch / time tiling ----
    if B <= 8:
        tile_b = 8
    else:
        # >= 2 batch tiles so the "parallel" axis spans both v7x TensorCores;
        # capped at 128 rows (friendlier to v5e's single store slot / f32 VPU).
        tile_b = min(128, _round_up(pl.cdiv(B, 2), 16))
    B_pad = _round_up(max(B, tile_b), tile_b)
    nb = B_pad // tile_b

    t_blk = min(64, _round_up(T, 16))        # time steps per grid step
    T_pad = _round_up(T, t_blk)
    nt = T_pad // t_blk

    gates_x = jnp.pad(gates_x, ((0, T_pad - T), (0, B_pad - B), (0, 0)))

    # ---- explicit VMEM budget (default scoped limit is only 16/32 MiB) ----
    itm = jnp.dtype(compute_dtype).itemsize
    need = (2 * t_blk * tile_b * 4 * Hp * itm      # double-buffered streamed gates
            + 2 * Hp * 4 * Hp * itm                # resident W_hh (2 bufs by default)
            + 2 * tile_b * Hp * 4                  # output block
            + 2 * tile_b * Hp * 4)                 # h/c scratch
    vmem_limit = int(min(64 * 2 ** 20, max(32 * 2 ** 20, 2 * need)))

    kernel = functools.partial(_lstm_recurrence_kernel, hidden_pad=Hp,
                               t_blk=t_blk, seq_len=T, compute_dtype=compute_dtype)

    h_last = pl.pallas_call(
        kernel,
        out_shape=jax.ShapeDtypeStruct((B_pad, Hp), f32),
        grid_spec=pltpu.PrefetchScalarGridSpec(
            num_scalar_prefetch=0,
            grid=(nb, nt),                                    # time axis last (sequential)
            in_specs=[
                # streamed, double-buffered precomputed gate slab
                pl.BlockSpec((t_blk, tile_b, 4 * Hp), lambda bb, tt: (tt, bb, 0)),
                # VMEM-resident recurrent weight
                pl.BlockSpec((Hp, 4 * Hp), lambda bb, tt: (0, 0)),
            ],
            out_specs=pl.BlockSpec((tile_b, Hp), lambda bb, tt: (bb, 0)),
            scratch_shapes=[
                pltpu.VMEM((tile_b, Hp), f32),                # h state
                pltpu.VMEM((tile_b, Hp), f32),                # c state
            ],
        ),
        compiler_params=pltpu.CompilerParams(
            dimension_semantics=("parallel", "arbitrary"),
            vmem_limit_bytes=vmem_limit,
        ),
    )(gates_x, w_hh)

    # ---- classifier head on the last hidden state: tiny matmul, done in XLA f32
    #      (keeps W_fc out of VMEM for the whole time sweep) ----
    out = h_last[:B, :H] @ params["w_fc"].astype(f32) + params["b_fc"].astype(f32)[0]
    return out.astype(x.dtype)


def _reference(x, params):
    """Pure-JAX replica of the PyTorch LSTMClassifier forward (h0=c0=0, last step -> fc)."""
    B, T, D = x.shape
    H = params["w_hh"].shape[0]
    h = jnp.zeros((B, H), jnp.float32)
    c = jnp.zeros((B, H), jnp.float32)
    for t in range(T):
        gates = x[:, t, :] @ params["w_ih"] + h @ params["w_hh"] + params["b"][0]
        i = jax.nn.sigmoid(gates[:, 0 * H:1 * H])
        f = jax.nn.sigmoid(gates[:, 1 * H:2 * H])
        g = jnp.tanh(gates[:, 2 * H:3 * H])
        o = jax.nn.sigmoid(gates[:, 3 * H:4 * H])
        c = f * c + i * g
        h = o * jnp.tanh(c)
    return h @ params["w_fc"] + params["b_fc"][0]


def init_params(key, input_size, hidden_size, output_size):
    ks = jax.random.split(key, 5)
    s = 1.0 / jnp.sqrt(hidden_size)
    f32 = jnp.float32
    return {
        # Weights stored pre-transposed as (in, 4H), gate order [i|f|g|o];
        # bias is b_ih + b_hh folded into one (1, 4H) row.
        "w_ih": jax.random.uniform(ks[0], (input_size, 4 * hidden_size), f32, -s, s),
        "w_hh": jax.random.uniform(ks[1], (hidden_size, 4 * hidden_size), f32, -s, s),
        "b":    jax.random.uniform(ks[2], (1, 4 * hidden_size), f32, -s, s),
        "w_fc": jax.random.uniform(ks[3], (hidden_size, output_size), f32, -s, s),
        "b_fc": jax.random.uniform(ks[4], (1, output_size), f32, -s, s),
    }


if __name__ == "__main__":
    # Small shapes consistent with the module: (batch, seq, input) -> (batch, output).
    B, T, input_size, hidden_size, output_size = 4, 8, 16, 32, 8

    key = jax.random.PRNGKey(0)
    kx, kp = jax.random.split(key)
    x = jax.random.normal(kx, (B, T, input_size), jnp.float32)
    params = init_params(kp, input_size, hidden_size, output_size)

    out = lstm_classifier(x, params)
    out = jax.block_until_ready(out)

    ref = _reference(x, params)
    assert out.shape == (B, output_size)
    err = jnp.max(jnp.abs(out - ref))
    # bf16 recurrent matmul / streamed gates (f32 accumulation + f32 state)
    assert jnp.allclose(out, ref, rtol=2e-2, atol=2e-2), f"max abs err {err}"

    print("KERNEL_OK")
</pallas_src>

<mosaic_0001>
module attributes {stable_mosaic.version = 11 : i64} {
  func.func @_lstm_recurrence_kernel(%arg0: i32, %arg1: i32, %arg2: memref<16x8x512xbf16, #tpu.memory_space<vmem>>, %arg3: memref<128x512xbf16, #tpu.memory_space<vmem>>, %arg4: memref<8x128xf32, #tpu.memory_space<vmem>>, %arg5: memref<8x128xf32, #tpu.memory_space<vmem>>, %arg6: memref<8x128xf32, #tpu.memory_space<vmem>>) attributes {dimension_semantics = [#tpu.dimension_semantics<parallel>, #tpu.dimension_semantics<arbitrary>], iteration_bounds = array<i64: 1, 1>, scalar_prefetch = 0 : i64, scratch_operands = 2 : i64, tpu.core_type = #tpu.core_type<tc>, window_params = [{transform_indices = @transform_0, window_bounds = array<i64: 16, 8, 512>}, {pipeline_mode = #tpu.pipeline_mode<synchronous>, transform_indices = @transform_1, window_bounds = array<i64: 128, 512>}, {transform_indices = @transform_2, window_bounds = array<i64: 8, 128>}]} {
    %c0_i32 = arith.constant 0 : i32
    %0 = arith.cmpi eq, %arg1, %c0_i32 : i32
    %1 = arith.extui %0 : i1 to i32
    %c0_i32_0 = arith.constant 0 : i32
    %2 = arith.cmpi ne, %1, %c0_i32_0 : i32
    scf.if %2 {
      %cst = arith.constant 0.000000e+00 : f32
      %16 = vector.broadcast %cst : f32 to vector<8x128xf32>
      %c0_12 = arith.constant 0 : index
      %c0_13 = arith.constant 0 : index
      %17 = vector.load %arg5[%c0_12, %c0_13] : memref<8x128xf32, #tpu.memory_space<vmem>>, vector<8x128xf32>
      tpu.vector_store %arg5[%c0_12, %c0_13], %16 {strides = array<i32>} : memref<8x128xf32, #tpu.memory_space<vmem>>, vector<8x128xf32>,
      %cst_14 = arith.constant 0.000000e+00 : f32
      %18 = vector.broadcast %cst_14 : f32 to vector<8x128xf32>
      %c0_15 = arith.constant 0 : index
      %c0_16 = arith.constant 0 : index
      %19 = vector.load %arg6[%c0_15, %c0_16] : memref<8x128xf32, #tpu.memory_space<vmem>>, vector<8x128xf32>
      tpu.vector_store %arg6[%c0_15, %c0_16], %18 {strides = array<i32>} : memref<8x128xf32, #tpu.memory_space<vmem>>, vector<8x128xf32>,
    } else {
    }
    %c16_i32 = arith.constant 16 : i32
    %3 = arith.muli %arg1, %c16_i32 : i32
    %c8_i32 = arith.constant 8 : i32
    %4 = arith.subi %c8_i32, %3 : i32
    %c16_i32_1 = arith.constant 16 : i32
    %5 = arith.minsi %c16_i32_1, %4 : i32
    %c0 = arith.constant 0 : index
    %c0_2 = arith.constant 0 : index
    %6 = vector.load %arg5[%c0, %c0_2] : memref<8x128xf32, #tpu.memory_space<vmem>>, vector<8x128xf32>
    %c0_3 = arith.constant 0 : index
    %c0_4 = arith.constant 0 : index
    %7 = vector.load %arg6[%c0_3, %c0_4] : memref<8x128xf32, #tpu.memory_space<vmem>>, vector<8x128xf32>
    %c0_i32_5 = arith.constant 0 : i32
    %8 = arith.subi %5, %c0_i32_5 : i32
    %9 = arith.addi %c0_i32_5, %8 : i32
    %c1_i32 = arith.constant 1 : i32
    %10:2 = scf.for %arg7 = %c0_i32_5 to %9 step %c1_i32 iter_args(%arg8 = %6, %arg9 = %7) -> (vector<8x128xf32>, vector<8x128xf32>)  : i32 {
      %16 = arith.truncf %arg8 : vector<8x128xf32> to vector<8x128xbf16>
      %c0_12 = arith.constant 0 : index
      %c0_13 = arith.constant 0 : index
      %17 = vector.load %arg3[%c0_12, %c0_13] : memref<128x512xbf16, #tpu.memory_space<vmem>>, vector<128x512xbf16>
      %cst = arith.constant dense<0.000000e+00> : vector<8x512xf32>
      %18 = tpu.matmul %16, %17, %cst {dimension_numbers = #tpu.dot_dimension_numbers<[1], [0], [0], [1], [0, 0, 1, 1], [], []>} : vector<8x128xbf16>, vector<128x512xbf16>, vector<8x512xf32> -> vector<8x512xf32>
      %19 = arith.index_cast %arg7 : i32 to index
      %c0_14 = arith.constant 0 : index
      %c0_15 = arith.constant 0 : index
      %20 = vector.load %arg2[%19, %c0_14, %c0_15] : memref<16x8x512xbf16, #tpu.memory_space<vmem>>, vector<1x8x512xbf16>
      %21 = vector.shape_cast %20 : vector<1x8x512xbf16> to vector<8x512xbf16>
      %22 = arith.extf %21 : vector<8x512xbf16> to vector<8x512xf32>
      %23 = arith.addf %22, %18 : vector<8x512xf32>
      %24 = vector.extract_strided_slice %23 {offsets = [0, 0], sizes = [8, 128], strides = [1, 1]} : vector<8x512xf32> to vector<8x128xf32>
      %25 = arith.negf %24 : vector<8x128xf32>
      %26 = math.exp %25 : vector<8x128xf32>
      %cst_16 = arith.constant 1.000000e+00 : f32
      %27 = vector.broadcast %cst_16 : f32 to vector<8x128xf32>
      %28 = arith.addf %27, %26 : vector<8x128xf32>
      %29 = arith.divf %27, %28 : vector<8x128xf32>
      %30 = vector.extract_strided_slice %23 {offsets = [0, 128], sizes = [8, 128], strides = [1, 1]} : vector<8x512xf32> to vector<8x128xf32>
      %31 = arith.negf %30 : vector<8x128xf32>
      %32 = math.exp %31 : vector<8x128xf32>
      %cst_17 = arith.constant 1.000000e+00 : f32
      %33 = vector.broadcast %cst_17 : f32 to vector<8x128xf32>
      %34 = arith.addf %33, %32 : vector<8x128xf32>
      %35 = arith.divf %33, %34 : vector<8x128xf32>
      %36 = vector.extract_strided_slice %23 {offsets = [0, 256], sizes = [8, 128], strides = [1, 1]} : vector<8x512xf32> to vector<8x128xf32>
      %37 = math.tanh %36 : vector<8x128xf32>
      %38 = vector.extract_strided_slice %23 {offsets = [0, 384], sizes = [8, 128], strides = [1, 1]} : vector<8x512xf32> to vector<8x128xf32>
      %39 = arith.negf %38 : vector<8x128xf32>
      %40 = math.exp %39 : vector<8x128xf32>
      %cst_18 = arith.constant 1.000000e+00 : f32
      %41 = vector.broadcast %cst_18 : f32 to vector<8x128xf32>
      %42 = arith.addf %41, %40 : vector<8x128xf32>
      %43 = arith.divf %41, %42 : vector<8x128xf32>
      %44 = arith.mulf %35, %arg9 : vector<8x128xf32>
      %45 = arith.mulf %29, %37 : vector<8x128xf32>
      %46 = arith.addf %44, %45 : vector<8x128xf32>
      %47 = math.tanh %46 : vector<8x128xf32>
      %48 = arith.mulf %43, %47 : vector<8x128xf32>
      scf.yield %48, %46 : vector<8x128xf32>, vector<8x128xf32>
    }
    %c0_6 = arith.constant 0 : index
    %c0_7 = arith.constant 0 : index
    %11 = vector.load %arg5[%c0_6, %c0_7] : memref<8x128xf32, #tpu.memory_space<vmem>>, vector<8x128xf32>
    tpu.vector_store %arg5[%c0_6, %c0_7], %10#0 {strides = array<i32>} : memref<8x128xf32, #tpu.memory_space<vmem>>, vector<8x128xf32>,
    %c0_8 = arith.constant 0 : index
    %c0_9 = arith.constant 0 : index
    %12 = vector.load %arg6[%c0_8, %c0_9] : memref<8x128xf32, #tpu.memory_space<vmem>>, vector<8x128xf32>
    tpu.vector_store %arg6[%c0_8, %c0_9], %10#1 {strides = array<i32>} : memref<8x128xf32, #tpu.memory_space<vmem>>, vector<8x128xf32>,
    %c0_i32_10 = arith.constant 0 : i32
    %13 = arith.cmpi eq, %arg1, %c0_i32_10 : i32
    %14 = arith.extui %13 : i1 to i32
    %c0_i32_11 = arith.constant 0 : i32
    %15 = arith.cmpi ne, %14, %c0_i32_11 : i32
    scf.if %15 {
      %c0_12 = arith.constant 0 : index
      %c0_13 = arith.constant 0 : index
      %16 = vector.load %arg4[%c0_12, %c0_13] : memref<8x128xf32, #tpu.memory_space<vmem>>, vector<8x128xf32>
      tpu.vector_store %arg4[%c0_12, %c0_13], %10#0 {strides = array<i32>} : memref<8x128xf32, #tpu.memory_space<vmem>>, vector<8x128xf32>,
    } else {
    }
    return
  }
  func.func @transform_0(%arg0: i32, %arg1: i32) -> (i32, i32, i32) {
    %c0_i32 = arith.constant 0 : i32
    %c0_i32_0 = arith.constant 0 : i32
    return %arg1, %arg0, %c0_i32 : i32, i32, i32
  }
  func.func @transform_1(%arg0: i32, %arg1: i32) -> (i32, i32) {
    %c0_i32 = arith.constant 0 : i32
    %c0_i32_0 = arith.constant 0 : i32
    %c0_i32_1 = arith.constant 0 : i32
    return %c0_i32, %c0_i32_0 : i32, i32
  }
  func.func @transform_2(%arg0: i32, %arg1: i32) -> (i32, i32) {
    %c0_i32 = arith.constant 0 : i32
    %c0_i32_0 = arith.constant 0 : i32
    return %arg0, %c0_i32 : i32, i32
  }
}

</mosaic_0001>

<bundles_post_ra>
// kernel: tpu_custom_call.1
= control target key start
LH: loop header
LB: loop body
LE: loop exit
PB: predicated region body
PF: predicated region fallthrough
CT: control target
= control target key end

     0   :  { %7 = vsyncpa [#allocation5], 0  ;;  %s687_s0 = inlined_call_operand.hbm [shape: bf16[16,8,512], index: 0, kind: input, shape index: {}]   ;;  %s688_s1 = inlined_call_operand.hbm [shape: bf16[128,512], index: 1, kind: input, shape index: {}]   ;;  %s689_s2 = inlined_call_operand.hbm [shape: f32[8,128], index: 2, kind: output, shape index: {}]  }
   0x1   :  { %8 = vsyncpa [#allocation8], 0 }
   0x2   :  { %9 = vsyncpa [#allocation6], 0  ;;  %s631_s9 = smov [#allocation4]  }
   0x3   :  { %s15_s10 = sshll.u32 %s631_s9, 4  ;;  %s16_s10 = int_to_ptr.vmem [resolvable:$true] %s15_s10 }
   0x4   :  { %s549_s11 = scalar_lea.vmem %s16_s10, 4096  ;;  %p554_p1 = scmp.lt.s32.totalorder %s16_s10, %s16_s10 }
   0x5   :  { %p550_p0 = scmp.ne.s32.totalorder %s16_s10, %s549_s11  ;;  %p555_p2 = scmp.lt.s32.totalorder %s549_s11, %s549_s11 }
   0x7   :  { %p556_p3 = por %p555_p2, %p554_p1 }
   0x9   :  { %p557_p4 = pnand %p556_p3, %p550_p0 }
   0xb   :  { %560 = shalt.err (!%p557_p4)
}
   0xc   :  { %s632_s12 = smov 256   ;;  %s633_s13 = smov 16  }
   0xd   :  { %21 = dma.hbm_to_vmem [thread:$0]  %s687_s0, 4096, %s16_s10, [#allocation5], %s632_s12, %s632_s12, %s633_s13  }
   0xe   :  { %s634_s16 = smov [#allocation7]  }
   0xf   :  { %s27_s17 = sshll.u32 %s634_s16, 4  ;;  %s28_s17 = int_to_ptr.vmem [resolvable:$true] %s27_s17 }
  0x10   :  { %s569_s18 = scalar_lea.vmem %s28_s17, 4096  ;;  %p574_p6 = scmp.lt.s32.totalorder %s28_s17, %s28_s17 }
  0x11   :  { %p570_p5 = scmp.ne.s32.totalorder %s28_s17, %s569_s18  ;;  %p575_p7 = scmp.lt.s32.totalorder %s569_s18, %s569_s18 }
  0x13   :  { %p576_p8 = por %p575_p7, %p574_p6 }
  0x15   :  { %p577_p9 = pnand %p576_p8, %p570_p5 }
  0x17   :  { %580 = shalt.err (!%p577_p9)
}
  0x18   :  { %33 = dma.hbm_to_vmem [thread:$0]  %s688_s1, 4096, %s28_s17, [#allocation8], %s632_s12, %s632_s12, %s633_s13  }
  0x19   :  { %613 = dma.done.wait [#allocation5], 4096  }
  0x1a   :  { %614 = vsyncadd [#allocation5], 4294963200 }
  0x1b   :  { %615 = dma.done.wait [#allocation8], 4096  }
  0x1c   :  { %616 = vsyncadd [#allocation8], 4294963200  ;;  %v658_v0 = vmov 0.0   ;;  %v660_v1 = vmov 0.0   ;;  %s662_s0 = smov 0  }
  0x1d LB: > { %v477_v2 = vld [vmem:[#allocation7 + $0xe4] ss:$16 sps:$4 sm:$0xff]   ;;  %v479_v3 = vld [vmem:[#allocation7 + $0xe0] ss:$16 sps:$4 sm:$0xff]   ;;  %v635_v4 = vmov 0   ;;  %v61_v34 = vpack.c.bf16 %v625_v1, %v625_v1  ;;  %s445_s1 = sshll.u32 %s629_s0, 4  ;;  %s629_s0 = sphi %s662_s0, %s56_s0   ;;  %v625_v1 = vphi %v660_v1, %v690_v1   ;;  %v621_v0 = vphi %v658_v0, %v370_v0  }
  0x1e   : > { %286 = vmatprep.mubr.bf16.mxu0 %v635_v4  ;;  %327 = vmatprep.mubr.bf16.mxu1 %v635_v4  ;;  %v480_v5 = vld [vmem:[#allocation7 + $0xc4] ss:$16 sps:$4 sm:$0xff]   ;;  %v482_v6 = vld [vmem:[#allocation7 + $0xc0] ss:$16 sps:$4 sm:$0xff]   ;;  %v488_v8 = vld [vmem:[#allocation7 + $0xec] ss:$16 sps:$4 sm:$0xff]  }
  0x1f   : > { %254 = vmatprep.subr.bf16.mxu0 %v477_v2  ;;  %v483_v7 = vld [vmem:[#allocation7 + $0xa4] ss:$16 sps:$4 sm:$0xff]   ;;  %v491_v9 = vld [vmem:[#allocation7 + $0xe8] ss:$16 sps:$4 sm:$0xff]   ;;  %v485_v10 = vld [vmem:[#allocation7 + $0xa0] ss:$16 sps:$4 sm:$0xff]   ;;  %295 = vmatprep.subr.bf16.mxu1 %v488_v8 }
  0x20   : > { %255 = vmatpush1.bf16.msra.mxu0 %v479_v3  ;;  %v486_v11 = vld [vmem:[#allocation7 + $0x84] ss:$16 sps:$4 sm:$0xff]   ;;  %296 = vmatpush1.bf16.msra.mxu1 %v491_v9  ;;  %v494_v12 = vld [vmem:[#allocation7 + $0xcc] ss:$16 sps:$4 sm:$0xff]   ;;  %v497_v13 = vld [vmem:[#allocation7 + $0xc8] ss:$16 sps:$4 sm:$0xff]  }
  0x21   : > { %256 = vmatprep.subr.bf16.mxu0 %v480_v5  ;;  %297 = vmatprep.subr.bf16.mxu1 %v494_v12  ;;  %v490_v14 = vld [vmem:[#allocation7 + $0x80] ss:$16 sps:$4 sm:$0xff]   ;;  %v492_v15 = vld [vmem:[#allocation7 + $0x64] ss:$16 sps:$4 sm:$0xff]   ;;  %v500_v16 = vld [vmem:[#allocation7 + $0xac] ss:$16 sps:$4 sm:$0xff]  }
  0x22   : > { %v503_v17 = vld [vmem:[#allocation7 + $0xa8] ss:$16 sps:$4 sm:$0xff]   ;;  %v506_v18 = vld [vmem:[#allocation7 + $0x8c] ss:$16 sps:$4 sm:$0xff]   ;;  %v496_v19 = vld [vmem:[#allocation7 + $0x60] ss:$16 sps:$4 sm:$0xff]  }
  0x23   : > { %v498_v20 = vld [vmem:[#allocation7 + $0x44] ss:$16 sps:$4 sm:$0xff]   ;;  %v509_v21 = vld [vmem:[#allocation7 + $0x88] ss:$16 sps:$4 sm:$0xff]   ;;  %v512_v22 = vld [vmem:[#allocation7 + $0x6c] ss:$16 sps:$4 sm:$0xff]  }
  0x24   : > { %257 = vmatpush1.bf16.msra.mxu0 %v482_v6  ;;  %298 = vmatpush1.bf16.msra.mxu1 %v497_v13  ;;  %v502_v23 = vld [vmem:[#allocation7 + $0x40] ss:$16 sps:$4 sm:$0xff]   ;;  %v504_v24 = vld [vmem:[#allocation7 + $0x24] ss:$16 sps:$4 sm:$0xff]   ;;  %v515_v25 = vld [vmem:[#allocation7 + $0x68] ss:$16 sps:$4 sm:$0xff]  }
  0x25   : > { %258 = vmatprep.subr.bf16.mxu0 %v483_v7  ;;  %299 = vmatprep.subr.bf16.mxu1 %v500_v16  ;;  %v516_v26 = vld [vmem:[#allocation7 + $0x4c] ss:$16 sps:$4 sm:$0xff]   ;;  %v508_v27 = vld [vmem:[#allocation7 + $0x20] ss:$16 sps:$4 sm:$0xff]   ;;  %v510_v28 = vld [vmem:[#allocation7 + $0x4] ss:$16 sps:$4 sm:$0xff]  }
  0x26   : > { %v518_v29 = vld [vmem:[#allocation7 + $0x48] ss:$16 sps:$4 sm:$0xff]   ;;  %v519_v30 = vld [vmem:[#allocation7 + $0x2c] ss:$16 sps:$4 sm:$0xff]   ;;  %v514_v31 = vld [vmem:[#allocation7] ss:$16 sps:$4 sm:$0xff]  }
  0x27   : > { %v521_v32 = vld [vmem:[#allocation7 + $0x28] ss:$16 sps:$4 sm:$0xff]   ;;  %v522_v33 = vld [vmem:[#allocation7 + $0xc] ss:$16 sps:$4 sm:$0xff]   ;;  %s338_s21 = scalar_lea.vmem [#allocation4], %s445_s1  ;;  %s56_s0 = sadd.s32 1, %s629_s0  }
  0x28   : > { %259 = vmatpush1.bf16.msra.mxu0 %v485_v10  ;;  %300 = vmatpush1.bf16.msra.mxu1 %v503_v17  ;;  %v524_v35 = vld [vmem:[#allocation7 + $0x8] ss:$16 sps:$4 sm:$0xff]   ;;  %v339_v36 = vld [vmem:[%s338_s21] sm:$0xff]  ;;  %p55_p10 = scmp.ge.s32.totalorder %s56_s0, 8 }
  0x29   : > { %260 = vmatprep.subr.bf16.mxu0 %v486_v11  ;;  %301 = vmatprep.subr.bf16.mxu1 %v506_v18  ;;  %v341_v37 = vunpack.c.l.bf16 %v339_v36  ;;  %v342_v38 = vunpack.c.h.bf16 %v339_v36  ;;  %v340_v47 = vld [vmem:[%s338_s21 + $0x8] sm:$0xff]  ;;  %s636_s22 = smov (%p55_p10), [#allocation9]  }
  0x2a   : > { %v344_v50 = vunpack.c.h.bf16 %v340_v47  ;;  %v343_v52 = vunpack.c.l.bf16 %v340_v47  ;;  %s385_s23 = sshll.u32 (%p55_p10), %s636_s22, 4  ;;  %s386_s23 = int_to_ptr.vmem [resolvable:$true] %s385_s23 }
  0x2b   :  { %s581_s24 = scalar_lea.vmem (%p55_p10), %s386_s23, 128  ;;  %p586_p12 = scmp.lt.s32.totalorder (%p55_p10), %s386_s23, %s386_s23 }
  0x2c   : > { %261 = vmatpush1.bf16.msra.mxu0 %v490_v14  ;;  %302 = vmatpush1.bf16.msra.mxu1 %v509_v21  ;;  %p582_p11 = scmp.ne.s32.totalorder (%p55_p10), %s386_s23, %s581_s24  ;;  %p587_p13 = scmp.lt.s32.totalorder (%p55_p10), %s581_s24, %s581_s24 }
  0x2d   : > { %262 = vmatprep.subr.bf16.mxu0 %v492_v15  ;;  %303 = vmatprep.subr.bf16.mxu1 %v512_v22 }
  0x2e   :  { %p588_p0 = por (%p55_p10), %p587_p13, %p586_p12 }
  0x30   : > { %263 = vmatpush1.bf16.msra.mxu0 %v496_v19  ;;  %304 = vmatpush1.bf16.msra.mxu1 %v515_v25  ;;  %p589_p1 = pnand (%p55_p10), %p588_p0, %p582_p11 }
  0x31   : > { %264 = vmatprep.subr.bf16.mxu0 %v498_v20  ;;  %305 = vmatprep.subr.bf16.mxu1 %v516_v26 }
  0x34   : > { %265 = vmatpush1.bf16.msra.mxu0 %v502_v23  ;;  %306 = vmatpush1.bf16.msra.mxu1 %v518_v29 }
  0x35   : > { %266 = vmatprep.subr.bf16.mxu0 %v504_v24  ;;  %307 = vmatprep.subr.bf16.mxu1 %v519_v30 }
  0x38   : > { %267 = vmatpush1.bf16.msra.mxu0 %v508_v27  ;;  %308 = vmatpush1.bf16.msra.mxu1 %v521_v32 }
  0x39   : > { %268 = vmatprep.subr.bf16.mxu0 %v510_v28  ;;  %309 = vmatprep.subr.bf16.mxu1 %v522_v33 }
  0x3c   : > { %269 = vmatpush1.bf16.msra.mxu0 %v514_v31  ;;  %310 = vmatpush1.bf16.msra.mxu1 %v524_v35 }
  0x3f   : > { %287 = vmatmul.mubr.bf16.vlgmr.msra.gmra.mxu0 %v61_v34  ;;  %328 = vmatmul.mubr.bf16.vlgmr.msra.gmra.mxu1 %v61_v34 }
  0xff   : > { %v288_v39 = vpop.f32.mrf.mxu0  ;;  %v329_v46 = vpop.f32.mrf.mxu1 }
 0x100   : > { %v345_v40 = vadd.f32 %v341_v37, %v288_v39  ;;  %v347_v55 = vadd.f32 %v343_v52, %v329_v46 }
 0x101   : > { %v290_v41 = vpop.f32.mrf.mxu0  ;;  %v331_v49 = vpop.f32.mrf.mxu1 }
 0x102   : > { %v442_v42 = vmul.f32 -1.442695, %v345_v40  ;;  %v346_v43 = vadd.f32 %v342_v38, %v290_v41  ;;  %v348_v54 = vadd.f32 %v344_v50, %v331_v49 }
 0x103   : > { %v292_v44 = vpop.f32.mrf.mxu0  ;;  %v333_v51 = vpop.f32.mrf.mxu1 }
 0x104   : > { %525 = vpow2.f32 %v442_v42  ;;  %v443_v45 = vmul.f32 -1.442695, %v346_v43  ;;  %v444_v56 = vmul.f32 -1.442695, %v348_v54 }
 0x105   : > { %v293_v48 = vpop.f32.mrf.mxu0  ;;  %v334_v53 = vpop.f32.mrf.mxu1 }
 0x106   : > { %527 = vpow2.f32 %v443_v45 }
 0x107   : > { %529 = vtanh.f32 %v347_v55 }
 0x108   : > { %531 = vpow2.f32 %v444_v56 }
 0x111   : > { %v526_v57 = vpop.eup %525 }
 0x112   : > { %v352_v58 = vadd.f32 1.0, %v526_v57 }
 0x113   : > { %v528_v59 = vpop.eup %527 }
 0x114   : > { %533 = vrcp.f32 %v352_v58  ;;  %v358_v60 = vadd.f32 1.0, %v528_v59  ;;  %v530_v61 = vpop.eup %529 }
 0x115   : > { %v532_v62 = vpop.eup %531 }
 0x116   : > { %535 = vrcp.f32 %v358_v60  ;;  %v365_v2 = vadd.f32 1.0, %v532_v62 }
 0x118   : > { %537 = vrcp.f32 %v365_v2 }
 0x121   : > { %v534_v63 = vpop.eup %533 }
 0x122   : > { %v369_v4 = vmul.f32 %v534_v63, %v530_v61 }
 0x123   : > { %v536_v1 = vpop.eup %535 }
 0x124   : > { %v368_v3 = vmul.f32 %v621_v0, %v536_v1 }
 0x125   : > { %v538_v5 = vpop.eup %537 }
 0x126   : > { %v370_v0 = vadd.f32 %v369_v4, %v368_v3  }
 0x128   : > { %539 = vtanh.f32 %v370_v0 }
 0x134   :  { %58 = sbr.rel (!%p55_p10) target bundleno = 29 (0x1d), region = 52 }
 0x135   : > { %v540_v6 = vpop.eup %539 }
 0x136   : > { %v372_v7 = vmul.f32 %v540_v6, %v538_v5  }
 0x138   : > { %v690_v1 = vmov %v372_v7  ;;  %378 = vst [vmem:[#allocation9] sm:$0xff] (%p55_p10), %v372_v7 }
 0x139   :  { %592 = shalt.err (!%p589_p1)
}
 0x13a   :  { %388 = dma.vmem_to_hbm [thread:$0]  %s386_s23, 128, %s689_s2, [#allocation6]  }
 0x13b   :  { %617 = dma.done.wait [#allocation6], 128  }
 0x13c   :  { %618 = vsyncadd [#allocation6], 4294967168 }
 0x13d   :  { %392 = vsyncpa [#allocation5], 1 }
 0x13e   :  { %393 = vsyncpa [#allocation8], 1 }
 0x13f   :  { %394 = vsyncpa [#allocation6], 1 }

</bundles_post_ra>
